<compile_context>
chip_gen: v6e
topology: v6e:2x2x1
jax: 0.10.0
libtpu: 0.0.40
codegen_flags: <defaults>
</compile_context>

<pallas_src>
import jax
import jax.numpy as jnp
from jax.experimental import pallas as pl
from jax.experimental.pallas import tpu as pltpu


def _deconv_kernel(x_ref, w_ref, b_ref, o_ref):
    # x_ref: (1, TR, W2)      upsampled input rows (TR = 2*TI output rows)
    # w_ref: (Cout, TR, W2)   periodic weight tile, resident in VMEM
    # b_ref: (Cout, 1, 1)     bias, resident in VMEM
    # o_ref: (1, Cout, TR, W2) final NCHW output block
    # Pure VPU broadcast multiply-add; no MXU (contraction dim is 1), no
    # in-kernel relayout (interleave is encoded in x_up / w_tile layouts).
    o_ref[0] = x_ref[...] * w_ref[...] + b_ref[...]


def _pick_row_block(H, W2, Cout, n_batch, target_bytes):
    """Pick TI = input rows per grid step.

    Valid TI: divides H and (2*TI is sublane-aligned or spans the full height).
    Prefer the largest TI whose output block fits `target_bytes`; make sure the
    total grid has >= 2 steps when possible (v7x megacore).
    """
    def valid(ti):
        return H % ti == 0 and ((2 * ti) % 8 == 0 or ti == H)

    cands = [ti for ti in range(1, H + 1) if valid(ti)]
    fitting = [ti for ti in cands if Cout * (2 * ti) * W2 * 4 <= target_bytes]
    ti = max(fitting) if fitting else min(cands)
    if n_batch * (H // ti) < 2:
        smaller = [t for t in cands if t < ti]
        if smaller:
            ti = max(smaller)
    return ti


def conv_transpose_2x2_s2(x, w, b, *, target_block_bytes=4 << 20):
    """ConvTranspose2d with kernel_size == stride == 2, padding 0, dilation 1.

    x: (N, 1, H, W)
    w: (1, C_out, 2, 2)   (PyTorch ConvTranspose2d weight layout)
    b: (C_out,)
    returns: (N, C_out, 2H, 2W) float32
    """
    N, Cin, H, W = x.shape
    assert Cin == 1, "kernel specialised for C_in == 1"
    _, Cout, KH, KW = w.shape
    assert (KH, KW) == (2, 2), "kernel specialised for 2x2 / stride 2"
    H2, W2 = H * KH, W * KW

    x = x.astype(jnp.float32)
    w = w.astype(jnp.float32)
    b = b.astype(jnp.float32)

    # 2x2 nearest-neighbour upsample of the input (tiny: 1/Cout of out bytes).
    # x_up[n, r, l] = x[n, 0, r // 2, l // 2]
    x_up = jnp.repeat(jnp.repeat(x[:, 0], KH, axis=1), KW, axis=2)  # (N, H2, W2)

    TI = _pick_row_block(H, W2, Cout, N, target_block_bytes)
    TR = KH * TI  # output rows per grid step

    # Periodic weight tile: w_tile[oc, r, l] = w[0, oc, r % 2, l % 2]
    w_tile = jnp.tile(w[0], (1, TI, W))          # (Cout, TR, W2)
    b_col = b.reshape(Cout, 1, 1)                # (Cout, 1, 1)

    grid = (N, H // TI)

    out = pl.pallas_call(
        _deconv_kernel,
        out_shape=jax.ShapeDtypeStruct((N, Cout, H2, W2), jnp.float32),
        grid_spec=pltpu.PrefetchScalarGridSpec(
            num_scalar_prefetch=0,
            grid=grid,
            in_specs=[
                # streamed upsampled-input rows
                pl.BlockSpec((1, TR, W2), lambda n, i: (n, i, 0)),
                # resident periodic weight tile
                pl.BlockSpec((Cout, TR, W2), lambda n, i: (0, 0, 0)),
                # resident bias
                pl.BlockSpec((Cout, 1, 1), lambda n, i: (0, 0, 0)),
            ],
            out_specs=pl.BlockSpec((1, Cout, TR, W2), lambda n, i: (n, 0, i, 0)),
        ),
        compiler_params=pltpu.CompilerParams(
            dimension_semantics=("parallel", "parallel"),
        ),
        cost_estimate=pl.CostEstimate(
            flops=2 * N * Cout * H2 * W2,
            transcendentals=0,
            bytes_accessed=4 * (N * H2 * W2 + Cout * TR * W2 + Cout
                                + N * Cout * H2 * W2),
        ),
    )(x_up, w_tile, b_col)

    return out


if __name__ == "__main__":
    key = jax.random.PRNGKey(0)
    kx, kw, kb = jax.random.split(key, 3)

    N, Cin, H, W = 2, 1, 16, 16
    Cout, KH, KW = 23, 2, 2

    x = jax.random.normal(kx, (N, Cin, H, W), dtype=jnp.float32)
    w = jax.random.normal(kw, (Cin, Cout, KH, KW), dtype=jnp.float32) * 0.5
    b = jax.random.normal(kb, (Cout,), dtype=jnp.float32) * 0.1

    out = jax.block_until_ready(conv_transpose_2x2_s2(x, w, b))

    # Pure-JAX reference of the same closed form (non-overlapping deconv).
    ref = jnp.einsum("nij,okl->noikjl", x[:, 0], w[0]).reshape(
        N, Cout, H * KH, W * KW
    ) + b[None, :, None, None]

    assert out.shape == (N, Cout, H * KH, W * KW)
    assert jnp.allclose(out, ref, rtol=1e-5, atol=1e-5), "mismatch vs reference"
    print("KERNEL_OK")
</pallas_src>

<mosaic_0001>
module attributes {stable_mosaic.version = 11 : i64} {
  func.func @_deconv_kernel(%arg0: i32, %arg1: i32, %arg2: memref<1x32x32xf32, #tpu.memory_space<vmem>>, %arg3: memref<23x32x32xf32, #tpu.memory_space<vmem>>, %arg4: memref<23x1x1xf32, #tpu.memory_space<vmem>>, %arg5: memref<1x23x32x32xf32, #tpu.memory_space<vmem>>) attributes {dimension_semantics = [#tpu.dimension_semantics<parallel>, #tpu.dimension_semantics<parallel>], iteration_bounds = array<i64: 2, 1>, scalar_prefetch = 0 : i64, scratch_operands = 0 : i64, tpu.core_type = #tpu.core_type<tc>, window_params = [{transform_indices = @transform_0, window_bounds = array<i64: 1, 32, 32>}, {pipeline_mode = #tpu.pipeline_mode<synchronous>, transform_indices = @transform_1, window_bounds = array<i64: 23, 32, 32>}, {pipeline_mode = #tpu.pipeline_mode<synchronous>, transform_indices = @transform_2, window_bounds = array<i64: 23, 1, 1>}, {transform_indices = @transform_3, window_bounds = array<i64: 1, 23, 32, 32>}]} {
    %c0 = arith.constant 0 : index
    %c0_0 = arith.constant 0 : index
    %c0_1 = arith.constant 0 : index
    %0 = vector.load %arg2[%c0, %c0_0, %c0_1] : memref<1x32x32xf32, #tpu.memory_space<vmem>>, vector<1x32x32xf32>
    %c0_2 = arith.constant 0 : index
    %c0_3 = arith.constant 0 : index
    %c0_4 = arith.constant 0 : index
    %1 = vector.load %arg3[%c0_2, %c0_3, %c0_4] : memref<23x32x32xf32, #tpu.memory_space<vmem>>, vector<23x32x32xf32>
    %2 = vector.broadcast %0 : vector<1x32x32xf32> to vector<23x32x32xf32>
    %3 = arith.mulf %2, %1 : vector<23x32x32xf32>
    %c0_5 = arith.constant 0 : index
    %c0_6 = arith.constant 0 : index
    %c0_7 = arith.constant 0 : index
    %4 = vector.load %arg4[%c0_5, %c0_6, %c0_7] : memref<23x1x1xf32, #tpu.memory_space<vmem>>, vector<23x1x1xf32>
    %5 = vector.broadcast %4 : vector<23x1x1xf32> to vector<23x32x32xf32>
    %6 = arith.addf %3, %5 : vector<23x32x32xf32>
    %c0_8 = arith.constant 0 : index
    %c0_9 = arith.constant 0 : index
    %c0_10 = arith.constant 0 : index
    %c0_11 = arith.constant 0 : index
    %7 = vector.load %arg5[%c0_8, %c0_9, %c0_10, %c0_11] : memref<1x23x32x32xf32, #tpu.memory_space<vmem>>, vector<1x23x32x32xf32>
    %8 = vector.shape_cast %7 : vector<1x23x32x32xf32> to vector<23x32x32xf32>
    %9 = vector.shape_cast %6 : vector<23x32x32xf32> to vector<1x23x32x32xf32>
    tpu.vector_store %arg5[%c0_8, %c0_9, %c0_10, %c0_11], %9 {strides = array<i32>} : memref<1x23x32x32xf32, #tpu.memory_space<vmem>>, vector<1x23x32x32xf32>,
    return
  }
  func.func @transform_0(%arg0: i32, %arg1: i32) -> (i32, i32, i32) {
    %c0_i32 = arith.constant 0 : i32
    %c0_i32_0 = arith.constant 0 : i32
    return %arg0, %arg1, %c0_i32 : i32, i32, i32
  }
  func.func @transform_1(%arg0: i32, %arg1: i32) -> (i32, i32, i32) {
    %c0_i32 = arith.constant 0 : i32
    %c0_i32_0 = arith.constant 0 : i32
    %c0_i32_1 = arith.constant 0 : i32
    %c0_i32_2 = arith.constant 0 : i32
    return %c0_i32, %c0_i32_0, %c0_i32_1 : i32, i32, i32
  }
  func.func @transform_2(%arg0: i32, %arg1: i32) -> (i32, i32, i32) {
    %c0_i32 = arith.constant 0 : i32
    %c0_i32_0 = arith.constant 0 : i32
    %c0_i32_1 = arith.constant 0 : i32
    %c0_i32_2 = arith.constant 0 : i32
    return %c0_i32, %c0_i32_0, %c0_i32_1 : i32, i32, i32
  }
  func.func @transform_3(%arg0: i32, %arg1: i32) -> (i32, i32, i32, i32) {
    %c0_i32 = arith.constant 0 : i32
    %c0_i32_0 = arith.constant 0 : i32
    %c0_i32_1 = arith.constant 0 : i32
    return %arg0, %c0_i32, %arg1, %c0_i32_0 : i32, i32, i32, i32
  }
}

</mosaic_0001>

<bundles_post_ra>
// kernel: tpu_custom_call.1
= control target key start
LH: loop header
LB: loop body
LE: loop exit
PB: predicated region body
PF: predicated region fallthrough
CT: control target
= control target key end

     0   :  { %8 = vsyncpa [#allocation3], 0  ;;  %s1780_s0 = inlined_call_operand.hbm [shape: f32[2,32,32], index: 0, kind: input, shape index: {}]   ;;  %s1781_s1 = inlined_call_operand.hbm [shape: f32[23,32,32], index: 1, kind: input, shape index: {}]   ;;  %s1782_s2 = inlined_call_operand.vmem [shape: f32[23,1,1], index: 2, kind: input, shape index: {}]   ;;  %s1783_s3 = inlined_call_operand.hbm [shape: f32[2,23,32,32], index: 3, kind: output, shape index: {}]  }
   0x1   :  { %10 = vsyncpa [#allocation3 + $0x1], 0 }
   0x2   :  { %11 = vsyncpa [#allocation6], 0 }
   0x3   :  { %12 = vsyncpa [#allocation4], 0 }
   0x4   :  { %14 = vsyncpa [#allocation4 + $0x1], 0  ;;  %s1228_s12 = smov 0   ;;  %s1230_s13 = smov 0  }
   0x5   :  { %s1232_s14 = smov 0   ;;  %s1234_s15 = smov 0  }
   0x6   :  { %s1236_s16 = smov 0   ;;  %s1238_s17 = smov 0  }
   0x7 LB: > { %s940_s18 = sadd.s32 4294967295, %s1198_s17   ;;  %s941_s19 = sadd.s32 4294967294, %s1198_s17   ;;  %s1198_s17 = sphi %s1238_s17, %s20_s17   ;;  %s1194_s16 = sphi %s1236_s16, %s1805_s16   ;;  %s1190_s15 = sphi %s1234_s15, %s1804_s15   ;;  %s1186_s14 = sphi %s1232_s14, %s1803_s14   ;;  %s1182_s13 = sphi %s1230_s13, %s1802_s13   ;;  %s1178_s12 = sphi %s1228_s12, %s1801_s12  }
   0x8   : > { %p54_p0 = scmp.ne.s32.totalorder %s1182_s13, %s1178_s12  ;;  %p1262_p1 = scmp.eq.s32.totalorder %s940_s18, 0 }
   0x9   : > { %p1266_p2 = scmp.eq.s32.totalorder %s940_s18, 1  ;;  %p128_p3 = scmp.eq.s32.totalorder %s941_s19, 1 }
   0xa   : > { %p1272_p4 = por %p1262_p1, %p54_p0  ;;  %p942_p5 = scmp.ge.s32.totalorder %s1198_s17, 1 }
   0xb   : > { %p1277_p6 = por %p128_p3, %p54_p0  ;;  %p135_p7 = scmp.lt.s32.totalorder %s1198_s17, 3 }
   0xc   : > { %s1789_s22 = scalar_select %p1272_p4, 1, 0 }
   0xd   : > { %s1790_s23 = scalar_select %p1277_p6, 1, 0 }
   0xe   : > { %p1282_p8 = pnand %p942_p5, %p135_p7  ;;  %s1200_s25 = smov [#allocation5]  }
   0xf   : > { %s147_s26 = sshll.u32 %s1200_s25, 4  ;;  %s32_s28 = sadd.s32 1, %s1194_s16  ;;  %s148_s26 = int_to_ptr.vmem [resolvable:$true] %s147_s26 }
  0x10   : > { %p988_p9 = pneg %p1282_p8  ;;  %s1071_s29 = scalar_lea.vmem %s148_s26, 11776 }
  0x11   : > { %p1072_p13 = scmp.ne.s32.totalorder %s148_s26, %s1071_s29  ;;  %p1079_p5 = scmp.lt.s32.totalorder %s148_s26, %s148_s26 }
  0x12   : > { %p1291_p11 = pnand %p988_p9, %p1262_p1  ;;  %p1080_p7 = scmp.lt.s32.totalorder %s1071_s29, %s1071_s29 }
  0x14   : > { %p1062_p12 = pneg %p1291_p11  ;;  %p1081_p6 = por %p1080_p7, %p1079_p5 }
  0x16   : > { %p1074_p0 = pnand %p1072_p13, %p1062_p12 }
  0x18   : > { %p1075_p3 = pneg %p1074_p0 }
  0x1a   : > { %p1082_p4 = pnand %p1081_p6, %p1075_p3 }
  0x1c   : > { %1085 = shalt.err (!%p1082_p4)
}
  0x1d   : > { %s1785_s30 = smov 128   ;;  %s1786_s4 = smov 8  }
  0x1e   : > { %991 = dma.hbm_to_vmem [thread:$0]  (!%p1291_p11), %s1781_s1, 11776, %s148_s26, [#allocation6], %s1785_s30, %s1785_s30, %s1786_s4  }
  0x1f   : > { %p34_p4 = scmp.ge.s32.totalorder %s32_s28, 2  ;;  %s41_s7 = sadd.s32 1, %s1186_s14 }
  0x20   : > { %p48_p6 = scmp.ne.s32.totalorder %s1186_s14, %s1182_s13  ;;  %p49_p9 = scmp.eq.s32.totalorder %s1198_s17, 0 }
  0x21   : > { %s1807_s28 = smov (%p34_p4, %s32_s28), 0  ;;  %p1001_p0 = scmp.lt.s32.totalorder %s1198_s17, 2 }
  0x22   : > { %p1312_p12 = por %p49_p9, %p48_p6  ;;  %p1318_p13 = por %p1266_p2, %p48_p6 }
  0x23   : > { %s36_s10 = ssub.s32 %s1194_s16, %s1807_s28  ;;  %s164_s11 = sand.u32 1, %s1186_s14  }
  0x24   : > { %p39_p11 = scmp.eq.s32.totalorder %s36_s10, 0  ;;  %s945_s18 = sshll.u32 %s164_s11, 5 }
  0x25   : > { %s977_s25 = sshll.u32 %s1194_s16, 9  ;;  %s168_s5 = scalar_lea.vmem [#allocation2], %s945_s18 }
  0x26   : > { %s1327_s19 = scalar_select %p39_p11, %s1186_s14, %s41_s7  }
  0x27   : > { %s176_s29 = scalar_lea.hbm %s1780_s0, %s977_s25  ;;  %s177_s6 = sshll.u32 %s168_s5, 4  ;;  %s178_s6 = int_to_ptr.vmem [resolvable:$true] %s177_s6 }
  0x28   : > { %p1335_p2 = pnand %p1001_p0, %p1312_p12  ;;  %s165_s30 = scalar_lea.sflag [#allocation3], %s164_s11 }
  0x29   : > { %s1099_s10 = scalar_lea.vmem %s178_s6, 512  ;;  %s1203_s7 = smov [#allocation2]  }
  0x2a   : > { %p1088_p3 = pneg %p1335_p2  ;;  %p1100_p5 = scmp.ne.s32.totalorder %s178_s6, %s1099_s10 }
  0x2b   : > { %s1104_s4 = sshll.u32 %s1203_s7, 4  ;;  %s1105_s4 = int_to_ptr.vmem [resolvable:$false] %s1104_s4 }
  0x2c   : > { %p1102_p7 = pnand %p1100_p5, %p1088_p3  ;;  %s1106_s25 = scalar_lea.vmem %s1105_s4, 1024 }
  0x2d   : > { %p1107_p6 = scmp.lt.s32.totalorder %s178_s6, %s1105_s4  ;;  %p1108_p9 = scmp.lt.s32.totalorder %s1106_s25, %s1099_s10 }
  0x2e   : > { %p1103_p4 = pneg %p1102_p7 }
  0x2f   : > { %p1109_p11 = por %p1108_p9, %p1107_p6 }
  0x31   : > { %p1110_p10 = pnand %p1109_p11, %p1103_p4 }
  0x33   : > { %1113 = shalt.err (!%p1110_p10)
}
  0x34   : > { %s1796_s8 = smov 8   ;;  %s1797_s18 = smov 128  }
  0x35   : > { %995 = dma.hbm_to_vmem [thread:$0]  (!%p1335_p2), %s176_s29, 512, %s178_s6, %s165_s30, %s1797_s18, %s1797_s18, %s1796_s8  }
  0x36   : > { %189 = sbr.rel (%p1282_p8) target bundleno = 255 (0xff), region = 32  ;;  %s1349_s11 = sand.u32 (!%p1282_p8), 1, %s1182_s13  }
  0x37   : > { %s949_s4 = sshll.u32 (!%p1282_p8), %s1349_s11, 5  ;;  %s192_s26 = scalar_lea.sflag (!%p1282_p8), [#allocation3], %s1349_s11 }
  0x38   : > { %s1353_s27 = scalar_lea.vmem (!%p1282_p8), [#allocation2], %s949_s4  ;;  %p1798_p10 = scmp.ne.s32.totalorder (!%p1282_p8), %s1789_s22, 0 }
  0x3b   : > { %1165 = dma.done.wait (%p1798_p10), %s192_s26, 512  }
  0x3c   : > { %1167 = vsyncadd (%p1798_p10), %s192_s26, 4294966784 }
  0x3d   : > { %1169 = dma.done.wait (%p1262_p1), [#allocation6], 11776  }
  0x3e   : > { %1171 = vsyncadd (%p1262_p1), [#allocation6], 4294955520  ;;  %v1204_v0 = vmov 0   ;;  %v953_v1 = vld [vmem:[%s1782_s2 + $0x2] ss:$0 sm:$0xff]  ;;  %v1436_v26 = vld [vmem:[%s1353_s27 + $0x8] sm:$0xff] }
  0x3f   : > { %1059 = vset.pattern.permute.xlu1 %v1204_v0  ;;  %1058 = vset.pattern.permute.xlu0 %v1204_v0  ;;  %v951_v2 = vld [vmem:[%s1782_s2] ss:$0 sm:$0xff]  ;;  %v954_v3 = vld [vmem:[%s1782_s2 + $0x3] ss:$0 sm:$0xff]  ;;  %v952_v4 = vld [vmem:[%s1782_s2 + $0x1] ss:$0 sm:$0xff] }
  0x40   : > { %559 = vperm.xlu1 %1059, %v953_v1   ;;  %551 = vperm.xlu0 %1058, %v951_v2   ;;  %v956_v5 = vld [vmem:[%s1782_s2 + $0x5] ss:$0 sm:$0xff]  ;;  %v955_v6 = vld [vmem:[%s1782_s2 + $0x4] ss:$0 sm:$0xff]  ;;  %v958_v7 = vld [vmem:[%s1782_s2 + $0x7] ss:$0 sm:$0xff] }
  0x41   : > { %v957_v8 = vld [vmem:[%s1782_s2 + $0x6] ss:$0 sm:$0xff]  ;;  %v960_v9 = vld [vmem:[%s1782_s2 + $0x9] ss:$0 sm:$0xff]  ;;  %v959_v10 = vld [vmem:[%s1782_s2 + $0x8] ss:$0 sm:$0xff] }
  0x42   : > { %v962_v11 = vld [vmem:[%s1782_s2 + $0xb] ss:$0 sm:$0xff]  ;;  %v961_v12 = vld [vmem:[%s1782_s2 + $0xa] ss:$0 sm:$0xff]  ;;  %v964_v13 = vld [vmem:[%s1782_s2 + $0xd] ss:$0 sm:$0xff] }
  0x43   : > { %v963_v14 = vld [vmem:[%s1782_s2 + $0xc] ss:$0 sm:$0xff]  ;;  %v966_v15 = vld [vmem:[%s1782_s2 + $0xf] ss:$0 sm:$0xff]  ;;  %v965_v16 = vld [vmem:[%s1782_s2 + $0xe] ss:$0 sm:$0xff] }
  0x44   : > { %563 = vperm.xlu1 %1059, %v954_v3   ;;  %555 = vperm.xlu0 %1058, %v952_v4   ;;  %v968_v17 = vld [vmem:[%s1782_s2 + $0x11] ss:$0 sm:$0xff]  ;;  %v967_v18 = vld [vmem:[%s1782_s2 + $0x10] ss:$0 sm:$0xff]  ;;  %v970_v19 = vld [vmem:[%s1782_s2 + $0x13] ss:$0 sm:$0xff] }
  0x45   : > { %v969_v20 = vld [vmem:[%s1782_s2 + $0x12] ss:$0 sm:$0xff]  ;;  %v972_v21 = vld [vmem:[%s1782_s2 + $0x15] ss:$0 sm:$0xff]  ;;  %v971_v22 = vld [vmem:[%s1782_s2 + $0x14] ss:$0 sm:$0xff] }
  0x46   : > { %v973_v23 = vld [vmem:[%s1782_s2 + $0x16] ss:$0 sm:$0xff]  ;;  %v236_v24 = vld [vmem:[#allocation5 + $0x40] sm:$0xff]  ;;  %v1442_v28 = vld [vmem:[%s1353_s27 + $0x18] sm:$0xff]  ;;  %vm734_vm0 = vcmask 261120   ;;  %s978_s30 = smul.u32 736, %s1349_s11 }
  0x47   : > { %v1433_v25 = vld [vmem:[%s1353_s27] sm:$0xff]  ;;  %v1439_v27 = vld [vmem:[%s1353_s27 + $0x10] sm:$0xff]  ;;  %v237_v29 = vld [vmem:[#allocation5 + $0x48] sm:$0xff]  ;;  %s979_s29 = smul.u32 11776, %s1190_s15  ;;  %s828_s21 = scalar_lea.sflag [#allocation4], %s1349_s11 }
  0x48   : > { %571 = vperm.xlu1 %1059, %v956_v5   ;;  %567 = vperm.xlu0 %1058, %v955_v6   ;;  %v238_v30 = vld [vmem:[#allocation5 + $0x50] sm:$0xff]  ;;  %v239_v31 = vld [vmem:[#allocation5 + $0x58] sm:$0xff]  ;;  %v228_v32 = vld [vmem:[#allocation5] sm:$0xff]  ;;  %v328_v41 = vmul.f32 %v236_v24, %v1433_v25  ;;  %v329_v42 = vmul.f32 %v237_v29, %v1436_v26  ;;  %s1463_s27 = scalar_lea.vmem [#allocation7], %s978_s30  ;;  %s1205_s10 = smov [#allocation7]  }
  0x49   : > { %v229_v33 = vld [vmem:[#allocation5 + $0x8] sm:$0xff]  ;;  %v230_v34 = vld [vmem:[#allocation5 + $0x10] sm:$0xff]  ;;  %v231_v35 = vld [vmem:[#allocation5 + $0x18] sm:$0xff]  ;;  %v330_v43 = vmul.f32 %v238_v30, %v1439_v27  ;;  %v331_v44 = vmul.f32 %v239_v31, %v1442_v28  ;;  %v320_v48 = vmul.f32 %v228_v32, %v1433_v25  ;;  %s843_s5 = sshll.u32 %s1463_s27, 4  ;;  %s1722_s6 = scalar_lea.hbm %s1783_s3, %s979_s29  ;;  %s1724_s5 = int_to_ptr.vmem [resolvable:$true] %s843_s5 }
  0x4a   : > { %v240_v36 = vld [vmem:[#allocation5 + $0x60] sm:$0xff]  ;;  %v241_v37 = vld [vmem:[#allocation5 + $0x68] sm:$0xff]  ;;  %v242_v38 = vld [vmem:[#allocation5 + $0x70] sm:$0xff]  ;;  %v321_v49 = vmul.f32 %v229_v33, %v1436_v26  ;;  %v322_v50 = vmul.f32 %v230_v34, %v1439_v27  ;;  %v323_v51 = vmul.f32 %v231_v35, %v1442_v28  ;;  %s1114_s20 = scalar_lea.vmem %s1724_s5, 11776  ;;  %s1118_s7 = sshll.u32 %s1205_s10, 4  ;;  %s1119_s7 = int_to_ptr.vmem [resolvable:$false] %s1118_s7 }
  0x4b   : > { %v243_v39 = vld [vmem:[#allocation5 + $0x78] sm:$0xff]  ;;  %v232_v40 = vld [vmem:[#allocation5 + $0x20] sm:$0xff]  ;;  %v233_v45 = vld [vmem:[#allocation5 + $0x28] sm:$0xff]  ;;  %v332_v52 = vmul.f32 %v240_v36, %v1433_v25  ;;  %v333_v53 = vmul.f32 %v241_v37, %v1436_v26  ;;  %v334_v54 = vmul.f32 %v242_v38, %v1439_v27  ;;  %p1115_p1 = scmp.ne.s32.totalorder %s1724_s5, %s1114_s20  ;;  %s1120_s25 = scalar_lea.vmem %s1119_s7, 23552 }
  0x4c   : > { %579 = vperm.xlu1 %1059, %v958_v7   ;;  %575 = vperm.xlu0 %1058, %v957_v8   ;;  %v234_v46 = vld [vmem:[#allocation5 + $0x30] sm:$0xff]  ;;  %v235_v47 = vld [vmem:[#allocation5 + $0x38] sm:$0xff]  ;;  %v335_v55 = vmul.f32 %v243_v39, %v1442_v28  ;;  %v248_v56 = vld [vmem:[#allocation5 + $0xa0] sm:$0xff]  ;;  %v324_v60 = vmul.f32 %v232_v40, %v1433_v25  ;;  %v325_v61 = vmul.f32 %v233_v45, %v1436_v26  ;;  %p1121_p0 = scmp.lt.s32.totalorder %s1724_s5, %s1119_s7  ;;  %p1122_p2 = scmp.lt.s32.totalorder %s1120_s25, %s1114_s20 }
  0x4d   : > { %v249_v57 = vld [vmem:[#allocation5 + $0xa8] sm:$0xff]  ;;  %v326_v62 = vmul.f32 %v234_v46, %v1439_v27  ;;  %v327_v63 = vmul.f32 %v235_v47, %v1442_v28  ;;  %v250_v0 = vld [vmem:[#allocation5 + $0xb0] sm:$0xff]  ;;  %v251_v1 = vld [vmem:[#allocation5 + $0xb8] sm:$0xff]  ;;  %p1116_p8 = pnand %p1115_p1, %p1318_p13 }
  0x4e   : > { %v244_v2 = vld [vmem:[#allocation5 + $0x80] sm:$0xff]  ;;  %v245_v7 = vld [vmem:[#allocation5 + $0x88] sm:$0xff]  ;;  %v246_v8 = vld [vmem:[#allocation5 + $0x90] sm:$0xff]  ;;  %p1123_p3 = por %p1122_p2, %p1121_p0 }
  0x4f   : > { %v338_v24 = vmul.f32 %v246_v8, %v1439_v27  ;;  %v258_v30 = vld [vmem:[#allocation5 + $0xf0] sm:$0xff]  ;;  %v259_v31 = vld [vmem:[#allocation5 + $0xf8] sm:$0xff]  ;;  %v252_v32 = vld [vmem:[#allocation5 + $0xc0] sm:$0xff]  ;;  %p1117_p12 = pneg %p1116_p8 }
  0x50   : > { %587 = vperm.xlu1 %1059, %v960_v9   ;;  %583 = vperm.xlu0 %1058, %v959_v10   ;;  %v247_v9 = vld [vmem:[#allocation5 + $0x98] sm:$0xff]  ;;  %v253_v37 = vld [vmem:[#allocation5 + $0xc8] sm:$0xff]  ;;  %v254_v38 = vld [vmem:[#allocation5 + $0xd0] sm:$0xff]  ;;  %v350_v46 = vmul.f32 %v258_v30, %v1439_v27  ;;  %v351_v47 = vmul.f32 %v259_v31, %v1442_v28 }
  0x51   : > { %v339_v29 = vmul.f32 %v247_v9, %v1442_v28  ;;  %v255_v39 = vld [vmem:[#allocation5 + $0xd8] sm:$0xff]  ;;  %v270_v30 = vld [vmem:[#allocation5 + $0x150] sm:$0xff]  ;;  %p1124_p5 = pnand %p1123_p3, %p1117_p12 }
  0x52   : > { %v271_v31 = vld [vmem:[#allocation5 + $0x158] sm:$0xff] }
  0x54   : > { %595 = vperm.xlu1 %1059, %v962_v11   ;;  %591 = vperm.xlu0 %1058, %v961_v12  }
  0x58   : > { %603 = vperm.xlu1 %1059, %v964_v13   ;;  %599 = vperm.xlu0 %1058, %v963_v14   ;;  %v340_v14 = vmul.f32 %v248_v56, %v1433_v25  ;;  %v266_v56 = vld [vmem:[#allocation5 + $0x130] sm:$0xff] }
  0x59   : > { %v358_v8 = vmul.f32 %v266_v56, %v1439_v27  ;;  %v278_v56 = vld [vmem:[#allocation5 + $0x190] sm:$0xff] }
  0x5c   : > { %611 = vperm.xlu1 %1059, %v966_v15   ;;  %607 = vperm.xlu0 %1058, %v965_v16   ;;  %v341_v15 = vmul.f32 %v249_v57, %v1436_v26  ;;  %v342_v16 = vmul.f32 %v250_v0, %v1439_v27  ;;  %v267_v57 = vld [vmem:[#allocation5 + $0x138] sm:$0xff]  ;;  %v262_v0 = vld [vmem:[#allocation5 + $0x110] sm:$0xff] }
  0x5d   : > { %v359_v9 = vmul.f32 %v267_v57, %v1442_v28  ;;  %v279_v57 = vld [vmem:[#allocation5 + $0x198] sm:$0xff] }
  0x60   : > { %619 = vperm.xlu1 %1059, %v968_v17   ;;  %615 = vperm.xlu0 %1058, %v967_v18   ;;  %v343_v17 = vmul.f32 %v251_v1, %v1442_v28  ;;  %v256_v18 = vld [vmem:[#allocation5 + $0xe0] sm:$0xff]  ;;  %v263_v1 = vld [vmem:[#allocation5 + $0x118] sm:$0xff] }
  0x64   : > { %627 = vperm.xlu1 %1059, %v970_v19   ;;  %623 = vperm.xlu0 %1058, %v969_v20   ;;  %v257_v19 = vld [vmem:[#allocation5 + $0xe8] sm:$0xff] }
  0x65   : > { %v349_v45 = vmul.f32 %v257_v19, %v1436_v26  ;;  %v275_v19 = vld [vmem:[#allocation5 + $0x178] sm:$0xff] }
  0x68   : > { %635 = vperm.xlu1 %1059, %v972_v21   ;;  %631 = vperm.xlu0 %1058, %v971_v22   ;;  %v336_v22 = vmul.f32 %v244_v2, %v1433_v25 }
  0x6c   : > { %639 = vperm.xlu0 %1058, %v973_v23   ;;  %v337_v23 = vmul.f32 %v245_v7, %v1436_v26 }
  0xbb   : > { %v560_v58 = vpop.permute.xlu1 %559  ;;  %v552_v59 = vpop.permute.xlu0 %551 }
  0xbc   : > { %v650_v3 = vadd.f32 %v560_v58, %v328_v41  ;;  %v651_v4 = vadd.f32 %v560_v58, %v329_v42  ;;  %v652_v5 = vadd.f32 %v560_v58, %v330_v43  ;;  %v653_v6 = vadd.f32 %v560_v58, %v331_v44  ;;  %v260_v58 = vld [vmem:[#allocation5 + $0x100] sm:$0xff] }
  0xbd   : > { %v642_v10 = vadd.f32 %v552_v59, %v320_v48  ;;  %v643_v11 = vadd.f32 %v552_v59, %v321_v49  ;;  %v644_v12 = vadd.f32 %v552_v59, %v322_v50  ;;  %v645_v13 = vadd.f32 %v552_v59, %v323_v51  ;;  %v264_v48 = vld [vmem:[#allocation5 + $0x120] sm:$0xff]  ;;  %v265_v49 = vld [vmem:[#allocation5 + $0x128] sm:$0xff] }
  0xbe   : > { %743 = vst.msk [vmem:[%s1463_s27 + $0x40] sm:$0xff] %vm734_vm0, %v650_v3  ;;  %744 = vst.msk [vmem:[%s1463_s27 + $0x48] sm:$0xff] %vm734_vm0, %v651_v4  ;;  %v348_v44 = vmul.f32 %v256_v18, %v1433_v25  ;;  %v357_v7 = vmul.f32 %v265_v49, %v1436_v26  ;;  %v274_v18 = vld [vmem:[#allocation5 + $0x170] sm:$0xff]  ;;  %v283_v49 = vld [vmem:[#allocation5 + $0x1b8] sm:$0xff] }
  0xbf   : > { %745 = vst.msk [vmem:[%s1463_s27 + $0x50] sm:$0xff] %vm734_vm0, %v652_v5  ;;  %746 = vst.msk [vmem:[%s1463_s27 + $0x58] sm:$0xff] %vm734_vm0, %v653_v6  ;;  %v564_v20 = vpop.permute.xlu1 %563  ;;  %v556_v21 = vpop.permute.xlu0 %555  ;;  %v356_v6 = vmul.f32 %v264_v48, %v1433_v25  ;;  %v282_v48 = vld [vmem:[#allocation5 + $0x1b0] sm:$0xff] }
  0xc0   : > { %735 = vst.msk [vmem:[%s1463_s27] sm:$0xff] %vm734_vm0, %v642_v10  ;;  %736 = vst.msk [vmem:[%s1463_s27 + $0x8] sm:$0xff] %vm734_vm0, %v643_v11  ;;  %v654_v33 = vadd.f32 %v564_v20, %v332_v52  ;;  %v655_v34 = vadd.f32 %v564_v20, %v333_v53  ;;  %v656_v35 = vadd.f32 %v564_v20, %v334_v54  ;;  %v272_v10 = vld [vmem:[#allocation5 + $0x160] sm:$0xff]  ;;  %v273_v11 = vld [vmem:[#allocation5 + $0x168] sm:$0xff] }
  0xc1   : > { %737 = vst.msk [vmem:[%s1463_s27 + $0x10] sm:$0xff] %vm734_vm0, %v644_v12  ;;  %738 = vst.msk [vmem:[%s1463_s27 + $0x18] sm:$0xff] %vm734_vm0, %v645_v13  ;;  %v657_v36 = vadd.f32 %v564_v20, %v335_v55  ;;  %v646_v40 = vadd.f32 %v556_v21, %v324_v60  ;;  %v647_v41 = vadd.f32 %v556_v21, %v325_v61  ;;  %v268_v20 = vld [vmem:[#allocation5 + $0x140] sm:$0xff] }
  0xc2   : > { %v648_v42 = vadd.f32 %v556_v21, %v326_v62  ;;  %v649_v43 = vadd.f32 %v556_v21, %v327_v63  ;;  %747 = vst.msk [vmem:[%s1463_s27 + $0x60] sm:$0xff] %vm734_vm0, %v654_v33  ;;  %748 = vst.msk [vmem:[%s1463_s27 + $0x68] sm:$0xff] %vm734_vm0, %v655_v34  ;;  %v344_v52 = vmul.f32 %v252_v32, %v1433_v25  ;;  %v261_v63 = vld [vmem:[#allocation5 + $0x108] sm:$0xff] }
  0xc3   : > { %749 = vst.msk [vmem:[%s1463_s27 + $0x70] sm:$0xff] %vm734_vm0, %v656_v35  ;;  %750 = vst.msk [vmem:[%s1463_s27 + $0x78] sm:$0xff] %vm734_vm0, %v657_v36  ;;  %v572_v50 = vpop.permute.xlu1 %571  ;;  %v568_v51 = vpop.permute.xlu0 %567  ;;  %v345_v53 = vmul.f32 %v253_v37, %v1436_v26  ;;  %v346_v54 = vmul.f32 %v254_v38, %v1439_v27  ;;  %v347_v55 = vmul.f32 %v255_v39, %v1442_v28 }
  0xc4   : > { %739 = vst.msk [vmem:[%s1463_s27 + $0x20] sm:$0xff] %vm734_vm0, %v646_v40  ;;  %740 = vst.msk [vmem:[%s1463_s27 + $0x28] sm:$0xff] %vm734_vm0, %v647_v41  ;;  %v662_v59 = vadd.f32 %v572_v50, %v340_v14  ;;  %v663_v60 = vadd.f32 %v572_v50, %v341_v15  ;;  %v664_v61 = vadd.f32 %v572_v50, %v342_v16  ;;  %v280_v40 = vld [vmem:[#allocation5 + $0x1a0] sm:$0xff]  ;;  %v281_v41 = vld [vmem:[#allocation5 + $0x1a8] sm:$0xff] }
  0xc5   : > { %741 = vst.msk [vmem:[%s1463_s27 + $0x30] sm:$0xff] %vm734_vm0, %v648_v42  ;;  %742 = vst.msk [vmem:[%s1463_s27 + $0x38] sm:$0xff] %vm734_vm0, %v649_v43  ;;  %v665_v62 = vadd.f32 %v572_v50, %v343_v17  ;;  %v658_v2 = vadd.f32 %v568_v51, %v336_v22  ;;  %v659_v3 = vadd.f32 %v568_v51, %v337_v23  ;;  %v276_v50 = vld [vmem:[#allocation5 + $0x180] sm:$0xff] }
  0xc6   : > { %v660_v4 = vadd.f32 %v568_v51, %v338_v24  ;;  %v661_v5 = vadd.f32 %v568_v51, %v339_v29  ;;  %755 = vst.msk [vmem:[%s1463_s27 + $0xa0] sm:$0xff] %vm734_vm0, %v662_v59  ;;  %756 = vst.msk [vmem:[%s1463_s27 + $0xa8] sm:$0xff] %vm734_vm0, %v663_v60  ;;  %v352_v14 = vmul.f32 %v260_v58, %v1433_v25  ;;  %v269_v29 = vld [vmem:[#allocation5 + $0x148] sm:$0xff] }
  0xc7   : > { %757 = vst.msk [vmem:[%s1463_s27 + $0xb0] sm:$0xff] %vm734_vm0, %v664_v61  ;;  %758 = vst.msk [vmem:[%s1463_s27 + $0xb8] sm:$0xff] %vm734_vm0, %v665_v62  ;;  %v580_v12 = vpop.permute.xlu1 %579  ;;  %v576_v13 = vpop.permute.xlu0 %575  ;;  %v353_v15 = vmul.f32 %v261_v63, %v1436_v26  ;;  %v354_v16 = vmul.f32 %v262_v0, %v1439_v27  ;;  %v355_v17 = vmul.f32 %v263_v1, %v1442_v28 }
  0xc8   : > { %751 = vst.msk [vmem:[%s1463_s27 + $0x80] sm:$0xff] %vm734_vm0, %v658_v2  ;;  %752 = vst.msk [vmem:[%s1463_s27 + $0x88] sm:$0xff] %vm734_vm0, %v659_v3  ;;  %v670_v21 = vadd.f32 %v580_v12, %v348_v44  ;;  %v671_v22 = vadd.f32 %v580_v12, %v349_v45  ;;  %v672_v23 = vadd.f32 %v580_v12, %v350_v46  ;;  %v288_v2 = vld [vmem:[#allocation5 + $0x1e0] sm:$0xff]  ;;  %v289_v3 = vld [vmem:[#allocation5 + $0x1e8] sm:$0xff] }
  0xc9   : > { %753 = vst.msk [vmem:[%s1463_s27 + $0x90] sm:$0xff] %vm734_vm0, %v660_v4  ;;  %754 = vst.msk [vmem:[%s1463_s27 + $0x98] sm:$0xff] %vm734_vm0, %v661_v5  ;;  %v673_v24 = vadd.f32 %v580_v12, %v351_v47  ;;  %v666_v32 = vadd.f32 %v576_v13, %v344_v52  ;;  %v667_v33 = vadd.f32 %v576_v13, %v345_v53  ;;  %v284_v12 = vld [vmem:[#allocation5 + $0x1c0] sm:$0xff] }
  0xca   : > { %v668_v34 = vadd.f32 %v576_v13, %v346_v54  ;;  %v669_v35 = vadd.f32 %v576_v13, %v347_v55  ;;  %763 = vst.msk [vmem:[%s1463_s27 + $0xe0] sm:$0xff] %vm734_vm0, %v670_v21  ;;  %764 = vst.msk [vmem:[%s1463_s27 + $0xe8] sm:$0xff] %vm734_vm0, %v671_v22  ;;  %v364_v36 = vmul.f32 %v272_v10, %v1433_v25  ;;  %v277_v55 = vld [vmem:[#allocation5 + $0x188] sm:$0xff]  ;;  %v290_v10 = vld [vmem:[#allocation5 + $0x1f0] sm:$0xff] }
  0xcb   : > { %765 = vst.msk [vmem:[%s1463_s27 + $0xf0] sm:$0xff] %vm734_vm0, %v672_v23  ;;  %766 = vst.msk [vmem:[%s1463_s27 + $0xf8] sm:$0xff] %vm734_vm0, %v673_v24  ;;  %v365_v37 = vmul.f32 %v273_v11, %v1436_v26  ;;  %v366_v38 = vmul.f32 %v274_v18, %v1439_v27  ;;  %v367_v39 = vmul.f32 %v275_v19, %v1442_v28  ;;  %v588_v42 = vpop.permute.xlu1 %587  ;;  %v584_v43 = vpop.permute.xlu0 %583  ;;  %v291_v11 = vld [vmem:[#allocation5 + $0x1f8] sm:$0xff]  ;;  %v286_v18 = vld [vmem:[#allocation5 + $0x1d0] sm:$0xff] }
  0xcc   : > { %759 = vst.msk [vmem:[%s1463_s27 + $0xc0] sm:$0xff] %vm734_vm0, %v666_v32  ;;  %760 = vst.msk [vmem:[%s1463_s27 + $0xc8] sm:$0xff] %vm734_vm0, %v667_v33  ;;  %v360_v44 = vmul.f32 %v268_v20, %v1433_v25  ;;  %v361_v45 = vmul.f32 %v269_v29, %v1436_v26  ;;  %v362_v46 = vmul.f32 %v270_v30, %v1439_v27  ;;  %v287_v19 = vld [vmem:[#allocation5 + $0x1d8] sm:$0xff]  ;;  %v296_v32 = vld [vmem:[#allocation5 + $0x220] sm:$0xff] }
  0xcd   : > { %761 = vst.msk [vmem:[%s1463_s27 + $0xd0] sm:$0xff] %vm734_vm0, %v668_v34  ;;  %762 = vst.msk [vmem:[%s1463_s27 + $0xd8] sm:$0xff] %vm734_vm0, %v669_v35  ;;  %v363_v47 = vmul.f32 %v271_v31, %v1442_v28  ;;  %v678_v51 = vadd.f32 %v588_v42, %v356_v6  ;;  %v679_v52 = vadd.f32 %v588_v42, %v357_v7  ;;  %v297_v33 = vld [vmem:[#allocation5 + $0x228] sm:$0xff] }
  0xce   : > { %v680_v53 = vadd.f32 %v588_v42, %v358_v8  ;;  %v681_v54 = vadd.f32 %v588_v42, %v359_v9  ;;  %v674_v58 = vadd.f32 %v584_v43, %v352_v14  ;;  %v675_v59 = vadd.f32 %v584_v43, %v353_v15  ;;  %v292_v42 = vld [vmem:[#allocation5 + $0x200] sm:$0xff] }
  0xcf   : > { %v676_v60 = vadd.f32 %v584_v43, %v354_v16  ;;  %v677_v61 = vadd.f32 %v584_v43, %v355_v17  ;;  %771 = vst.msk [vmem:[%s1463_s27 + $0x120] sm:$0xff] %vm734_vm0, %v678_v51  ;;  %772 = vst.msk [vmem:[%s1463_s27 + $0x128] sm:$0xff] %vm734_vm0, %v679_v52  ;;  %v372_v62 = vmul.f32 %v280_v40, %v1433_v25  ;;  %v596_v4 = vpop.permute.xlu1 %595  ;;  %v592_v5 = vpop.permute.xlu0 %591  ;;  %v285_v17 = vld [vmem:[#allocation5 + $0x1c8] sm:$0xff]  ;;  %v298_v40 = vld [vmem:[#allocation5 + $0x230] sm:$0xff] }
  0xd0   : > { %773 = vst.msk [vmem:[%s1463_s27 + $0x130] sm:$0xff] %vm734_vm0, %v680_v53  ;;  %774 = vst.msk [vmem:[%s1463_s27 + $0x138] sm:$0xff] %vm734_vm0, %v681_v54  ;;  %v373_v63 = vmul.f32 %v281_v41, %v1436_v26  ;;  %v374_v0 = vmul.f32 %v282_v48, %v1439_v27  ;;  %v375_v1 = vmul.f32 %v283_v49, %v1442_v28  ;;  %v299_v41 = vld [vmem:[#allocation5 + $0x238] sm:$0xff]  ;;  %v294_v48 = vld [vmem:[#allocation5 + $0x210] sm:$0xff] }
  0xd1   : > { %767 = vst.msk [vmem:[%s1463_s27 + $0x100] sm:$0xff] %vm734_vm0, %v674_v58  ;;  %768 = vst.msk [vmem:[%s1463_s27 + $0x108] sm:$0xff] %vm734_vm0, %v675_v59  ;;  %v368_v6 = vmul.f32 %v276_v50, %v1433_v25  ;;  %v369_v7 = vmul.f32 %v277_v55, %v1436_v26  ;;  %v370_v8 = vmul.f32 %v278_v56, %v1439_v27  ;;  %v295_v49 = vld [vmem:[#allocation5 + $0x218] sm:$0xff]  ;;  %v304_v58 = vld [vmem:[#allocation5 + $0x260] sm:$0xff] }
  0xd2   : > { %769 = vst.msk [vmem:[%s1463_s27 + $0x110] sm:$0xff] %vm734_vm0, %v676_v60  ;;  %770 = vst.msk [vmem:[%s1463_s27 + $0x118] sm:$0xff] %vm734_vm0, %v677_v61  ;;  %v371_v9 = vmul.f32 %v279_v57, %v1442_v28  ;;  %v686_v13 = vadd.f32 %v596_v4, %v364_v36  ;;  %v687_v14 = vadd.f32 %v596_v4, %v365_v37  ;;  %v305_v59 = vld [vmem:[#allocation5 + $0x268] sm:$0xff] }
  0xd3   : > { %v688_v15 = vadd.f32 %v596_v4, %v366_v38  ;;  %v689_v16 = vadd.f32 %v596_v4, %v367_v39  ;;  %v682_v20 = vadd.f32 %v592_v5, %v360_v44  ;;  %v683_v21 = vadd.f32 %v592_v5, %v361_v45  ;;  %v604_v34 = vpop.permute.xlu1 %603  ;;  %v600_v35 = vpop.permute.xlu0 %599  ;;  %v300_v4 = vld [vmem:[#allocation5 + $0x240] sm:$0xff] }
  0xd4   : > { %v684_v22 = vadd.f32 %v592_v5, %v362_v46  ;;  %v685_v23 = vadd.f32 %v592_v5, %v363_v47  ;;  %779 = vst.msk [vmem:[%s1463_s27 + $0x160] sm:$0xff] %vm734_vm0, %v686_v13  ;;  %780 = vst.msk [vmem:[%s1463_s27 + $0x168] sm:$0xff] %vm734_vm0, %v687_v14  ;;  %v380_v24 = vmul.f32 %v288_v2, %v1433_v25  ;;  %v293_v47 = vld [vmem:[#allocation5 + $0x208] sm:$0xff]  ;;  %v306_v2 = vld [vmem:[#allocation5 + $0x270] sm:$0xff] }
  0xd5   : > { %781 = vst.msk [vmem:[%s1463_s27 + $0x170] sm:$0xff] %vm734_vm0, %v688_v15  ;;  %782 = vst.msk [vmem:[%s1463_s27 + $0x178] sm:$0xff] %vm734_vm0, %v689_v16  ;;  %v381_v29 = vmul.f32 %v289_v3, %v1436_v26  ;;  %v382_v30 = vmul.f32 %v290_v10, %v1439_v27  ;;  %v383_v31 = vmul.f32 %v291_v11, %v1442_v28  ;;  %v307_v3 = vld [vmem:[#allocation5 + $0x278] sm:$0xff]  ;;  %v302_v10 = vld [vmem:[#allocation5 + $0x250] sm:$0xff] }
  0xd6   : > { %775 = vst.msk [vmem:[%s1463_s27 + $0x140] sm:$0xff] %vm734_vm0, %v682_v20  ;;  %776 = vst.msk [vmem:[%s1463_s27 + $0x148] sm:$0xff] %vm734_vm0, %v683_v21  ;;  %v376_v36 = vmul.f32 %v284_v12, %v1433_v25  ;;  %v377_v37 = vmul.f32 %v285_v17, %v1436_v26  ;;  %v378_v38 = vmul.f32 %v286_v18, %v1439_v27  ;;  %v303_v11 = vld [vmem:[#allocation5 + $0x258] sm:$0xff]  ;;  %v312_v20 = vld [vmem:[#allocation5 + $0x2a0] sm:$0xff] }
  0xd7   : > { %777 = vst.msk [vmem:[%s1463_s27 + $0x150] sm:$0xff] %vm734_vm0, %v684_v22  ;;  %778 = vst.msk [vmem:[%s1463_s27 + $0x158] sm:$0xff] %vm734_vm0, %v685_v23  ;;  %v379_v39 = vmul.f32 %v287_v19, %v1442_v28  ;;  %v694_v43 = vadd.f32 %v604_v34, %v372_v62  ;;  %v695_v44 = vadd.f32 %v604_v34, %v373_v63  ;;  %v612_v60 = vpop.permute.xlu1 %611  ;;  %v608_v61 = vpop.permute.xlu0 %607  ;;  %v313_v21 = vld [vmem:[#allocation5 + $0x2a8] sm:$0xff] }
  0xd8   : > { %v696_v45 = vadd.f32 %v604_v34, %v374_v0  ;;  %v697_v46 = vadd.f32 %v604_v34, %v375_v1  ;;  %v690_v50 = vadd.f32 %v600_v35, %v368_v6  ;;  %v691_v51 = vadd.f32 %v600_v35, %v369_v7  ;;  %v308_v34 = vld [vmem:[#allocation5 + $0x280] sm:$0xff] }
  0xd9   : > { %v692_v52 = vadd.f32 %v600_v35, %v370_v8  ;;  %v693_v53 = vadd.f32 %v600_v35, %v371_v9  ;;  %787 = vst.msk [vmem:[%s1463_s27 + $0x1a0] sm:$0xff] %vm734_vm0, %v694_v43  ;;  %788 = vst.msk [vmem:[%s1463_s27 + $0x1a8] sm:$0xff] %vm734_vm0, %v695_v44  ;;  %v388_v54 = vmul.f32 %v296_v32, %v1433_v25  ;;  %v301_v9 = vld [vmem:[#allocation5 + $0x248] sm:$0xff]  ;;  %v314_v32 = vld [vmem:[#allocation5 + $0x2b0] sm:$0xff] }
  0xda   : > { %789 = vst.msk [vmem:[%s1463_s27 + $0x1b0] sm:$0xff] %vm734_vm0, %v696_v45  ;;  %790 = vst.msk [vmem:[%s1463_s27 + $0x1b8] sm:$0xff] %vm734_vm0, %v697_v46  ;;  %v389_v55 = vmul.f32 %v297_v33, %v1436_v26  ;;  %v390_v56 = vmul.f32 %v298_v40, %v1439_v27  ;;  %v391_v57 = vmul.f32 %v299_v41, %v1442_v28  ;;  %v315_v33 = vld [vmem:[#allocation5 + $0x2b8] sm:$0xff]  ;;  %v310_v40 = vld [vmem:[#allocation5 + $0x290] sm:$0xff] }
  0xdb   : > { %783 = vst.msk [vmem:[%s1463_s27 + $0x180] sm:$0xff] %vm734_vm0, %v690_v50  ;;  %784 = vst.msk [vmem:[%s1463_s27 + $0x188] sm:$0xff] %vm734_vm0, %v691_v51  ;;  %v384_v62 = vmul.f32 %v292_v42, %v1433_v25  ;;  %v385_v63 = vmul.f32 %v293_v47, %v1436_v26  ;;  %v386_v0 = vmul.f32 %v294_v48, %v1439_v27  ;;  %v620_v22 = vpop.permute.xlu1 %619  ;;  %v616_v23 = vpop.permute.xlu0 %615  ;;  %v311_v41 = vld [vmem:[#allocation5 + $0x298] sm:$0xff] }
  0xdc   : > { %785 = vst.msk [vmem:[%s1463_s27 + $0x190] sm:$0xff] %vm734_vm0, %v692_v52  ;;  %786 = vst.msk [vmem:[%s1463_s27 + $0x198] sm:$0xff] %vm734_vm0, %v693_v53  ;;  %v387_v1 = vmul.f32 %v295_v49, %v1442_v28  ;;  %v702_v5 = vadd.f32 %v612_v60, %v380_v24  ;;  %v703_v6 = vadd.f32 %v612_v60, %v381_v29 }
  0xdd   : > { %v704_v7 = vadd.f32 %v612_v60, %v382_v30  ;;  %v705_v8 = vadd.f32 %v612_v60, %v383_v31  ;;  %v698_v12 = vadd.f32 %v608_v61, %v376_v36  ;;  %v699_v13 = vadd.f32 %v608_v61, %v377_v37 }
  0xde   : > { %v700_v14 = vadd.f32 %v608_v61, %v378_v38  ;;  %v701_v15 = vadd.f32 %v608_v61, %v379_v39  ;;  %795 = vst.msk [vmem:[%s1463_s27 + $0x1e0] sm:$0xff] %vm734_vm0, %v702_v5  ;;  %796 = vst.msk [vmem:[%s1463_s27 + $0x1e8] sm:$0xff] %vm734_vm0, %v703_v6  ;;  %v396_v16 = vmul.f32 %v304_v58, %v1433_v25  ;;  %v309_v39 = vld [vmem:[#allocation5 + $0x288] sm:$0xff] }
  0xdf   : > { %797 = vst.msk [vmem:[%s1463_s27 + $0x1f0] sm:$0xff] %vm734_vm0, %v704_v7  ;;  %798 = vst.msk [vmem:[%s1463_s27 + $0x1f8] sm:$0xff] %vm734_vm0, %v705_v8  ;;  %v397_v17 = vmul.f32 %v305_v59, %v1436_v26  ;;  %v398_v18 = vmul.f32 %v306_v2, %v1439_v27  ;;  %v399_v19 = vmul.f32 %v307_v3, %v1442_v28  ;;  %v628_v50 = vpop.permute.xlu1 %627  ;;  %v624_v51 = vpop.permute.xlu0 %623  ;;  %v317_v61 = vld [vmem:[#allocation5 + $0x2c8] sm:$0xff] }
  0xe0   : > { %791 = vst.msk [vmem:[%s1463_s27 + $0x1c0] sm:$0xff] %vm734_vm0, %v698_v12  ;;  %792 = vst.msk [vmem:[%s1463_s27 + $0x1c8] sm:$0xff] %vm734_vm0, %v699_v13  ;;  %v392_v24 = vmul.f32 %v300_v4, %v1433_v25  ;;  %v393_v29 = vmul.f32 %v301_v9, %v1436_v26  ;;  %v394_v30 = vmul.f32 %v302_v10, %v1439_v27 }
  0xe1   : > { %793 = vst.msk [vmem:[%s1463_s27 + $0x1d0] sm:$0xff] %vm734_vm0, %v700_v14  ;;  %794 = vst.msk [vmem:[%s1463_s27 + $0x1d8] sm:$0xff] %vm734_vm0, %v701_v15  ;;  %v395_v31 = vmul.f32 %v303_v11, %v1442_v28  ;;  %v710_v35 = vadd.f32 %v620_v22, %v388_v54  ;;  %v711_v36 = vadd.f32 %v620_v22, %v389_v55 }
  0xe2   : > { %v712_v37 = vadd.f32 %v620_v22, %v390_v56  ;;  %v713_v38 = vadd.f32 %v620_v22, %v391_v57  ;;  %v706_v42 = vadd.f32 %v616_v23, %v384_v62  ;;  %v707_v43 = vadd.f32 %v616_v23, %v385_v63  ;;  %v316_v56 = vld [vmem:[#allocation5 + $0x2c0] sm:$0xff]  ;;  %v318_v62 = vld [vmem:[#allocation5 + $0x2d0] sm:$0xff]  ;;  %v319_v63 = vld [vmem:[#allocation5 + $0x2d8] sm:$0xff] }
  0xe3   : > { %v708_v44 = vadd.f32 %v616_v23, %v386_v0  ;;  %v709_v45 = vadd.f32 %v616_v23, %v387_v1  ;;  %803 = vst.msk [vmem:[%s1463_s27 + $0x220] sm:$0xff] %vm734_vm0, %v710_v35  ;;  %804 = vst.msk [vmem:[%s1463_s27 + $0x228] sm:$0xff] %vm734_vm0, %v711_v36  ;;  %v404_v46 = vmul.f32 %v312_v20, %v1433_v25  ;;  %v636_v4 = vpop.permute.xlu1 %635  ;;  %v632_v5 = vpop.permute.xlu0 %631 }
  0xe4   : > { %805 = vst.msk [vmem:[%s1463_s27 + $0x230] sm:$0xff] %vm734_vm0, %v712_v37  ;;  %806 = vst.msk [vmem:[%s1463_s27 + $0x238] sm:$0xff] %vm734_vm0, %v713_v38  ;;  %v405_v47 = vmul.f32 %v313_v21, %v1436_v26  ;;  %v406_v48 = vmul.f32 %v314_v32, %v1439_v27  ;;  %v407_v49 = vmul.f32 %v315_v33, %v1442_v28 }
  0xe5   : > { %799 = vst.msk [vmem:[%s1463_s27 + $0x200] sm:$0xff] %vm734_vm0, %v706_v42  ;;  %800 = vst.msk [vmem:[%s1463_s27 + $0x208] sm:$0xff] %vm734_vm0, %v707_v43  ;;  %v400_v52 = vmul.f32 %v308_v34, %v1433_v25  ;;  %v401_v53 = vmul.f32 %v309_v39, %v1436_v26  ;;  %v402_v54 = vmul.f32 %v310_v40, %v1439_v27 }
  0xe6   : > { %801 = vst.msk [vmem:[%s1463_s27 + $0x210] sm:$0xff] %vm734_vm0, %v708_v44  ;;  %802 = vst.msk [vmem:[%s1463_s27 + $0x218] sm:$0xff] %vm734_vm0, %v709_v45  ;;  %v403_v55 = vmul.f32 %v311_v41, %v1442_v28  ;;  %v718_v57 = vadd.f32 %v628_v50, %v396_v16  ;;  %v719_v58 = vadd.f32 %v628_v50, %v397_v17 }
  0xe7   : > { %v720_v59 = vadd.f32 %v628_v50, %v398_v18  ;;  %v721_v60 = vadd.f32 %v628_v50, %v399_v19  ;;  %v714_v0 = vadd.f32 %v624_v51, %v392_v24  ;;  %v715_v1 = vadd.f32 %v624_v51, %v393_v29 }
  0xe8   : > { %v716_v2 = vadd.f32 %v624_v51, %v394_v30  ;;  %v717_v3 = vadd.f32 %v624_v51, %v395_v31  ;;  %811 = vst.msk [vmem:[%s1463_s27 + $0x260] sm:$0xff] %vm734_vm0, %v718_v57  ;;  %812 = vst.msk [vmem:[%s1463_s27 + $0x268] sm:$0xff] %vm734_vm0, %v719_v58  ;;  %v408_v6 = vmul.f32 %v316_v56, %v1433_v25 }
  0xe9   : > { %813 = vst.msk [vmem:[%s1463_s27 + $0x270] sm:$0xff] %vm734_vm0, %v720_v59  ;;  %814 = vst.msk [vmem:[%s1463_s27 + $0x278] sm:$0xff] %vm734_vm0, %v721_v60  ;;  %v409_v7 = vmul.f32 %v317_v61, %v1436_v26  ;;  %v410_v8 = vmul.f32 %v318_v62, %v1439_v27  ;;  %v411_v9 = vmul.f32 %v319_v63, %v1442_v28  ;;  %v640_v26 = vpop.permute.xlu0 %639 }
  0xea   : > { %807 = vst.msk [vmem:[%s1463_s27 + $0x240] sm:$0xff] %vm734_vm0, %v714_v0  ;;  %808 = vst.msk [vmem:[%s1463_s27 + $0x248] sm:$0xff] %vm734_vm0, %v715_v1  ;;  %v726_v10 = vadd.f32 %v636_v4, %v404_v46  ;;  %v727_v11 = vadd.f32 %v636_v4, %v405_v47  ;;  %v728_v12 = vadd.f32 %v636_v4, %v406_v48 }
  0xeb   : > { %809 = vst.msk [vmem:[%s1463_s27 + $0x250] sm:$0xff] %vm734_vm0, %v716_v2  ;;  %810 = vst.msk [vmem:[%s1463_s27 + $0x258] sm:$0xff] %vm734_vm0, %v717_v3  ;;  %v729_v13 = vadd.f32 %v636_v4, %v407_v49  ;;  %v722_v14 = vadd.f32 %v632_v5, %v400_v52  ;;  %v723_v25 = vadd.f32 %v632_v5, %v401_v53 }
  0xec   : > { %v724_v15 = vadd.f32 %v632_v5, %v402_v54  ;;  %v725_v16 = vadd.f32 %v632_v5, %v403_v55  ;;  %819 = vst.msk [vmem:[%s1463_s27 + $0x2a0] sm:$0xff] %vm734_vm0, %v726_v10  ;;  %820 = vst.msk [vmem:[%s1463_s27 + $0x2a8] sm:$0xff] %vm734_vm0, %v727_v11  ;;  %v730_v27 = vadd.f32 %v640_v26, %v408_v6 }
  0xed   : > { %821 = vst.msk [vmem:[%s1463_s27 + $0x2b0] sm:$0xff] %vm734_vm0, %v728_v12  ;;  %822 = vst.msk [vmem:[%s1463_s27 + $0x2b8] sm:$0xff] %vm734_vm0, %v729_v13  ;;  %v731_v28 = vadd.f32 %v640_v26, %v409_v7  ;;  %v732_v17 = vadd.f32 %v640_v26, %v410_v8  ;;  %v733_v18 = vadd.f32 %v640_v26, %v411_v9 }
  0xee   : > { %815 = vst.msk [vmem:[%s1463_s27 + $0x280] sm:$0xff] %vm734_vm0, %v722_v14  ;;  %816 = vst.msk [vmem:[%s1463_s27 + $0x288] sm:$0xff] %vm734_vm0, %v723_v25 }
  0xef   : > { %817 = vst.msk [vmem:[%s1463_s27 + $0x290] sm:$0xff] %vm734_vm0, %v724_v15  ;;  %818 = vst.msk [vmem:[%s1463_s27 + $0x298] sm:$0xff] %vm734_vm0, %v725_v16 }
  0xf0   : > { %823 = vst.msk [vmem:[%s1463_s27 + $0x2c0] sm:$0xff] %vm734_vm0, %v730_v27  ;;  %824 = vst.msk [vmem:[%s1463_s27 + $0x2c8] sm:$0xff] %vm734_vm0, %v731_v28 }
  0xf1   : > { %825 = vst.msk [vmem:[%s1463_s27 + $0x2d0] sm:$0xff] %vm734_vm0, %v732_v17  ;;  %826 = vst.msk [vmem:[%s1463_s27 + $0x2d8] sm:$0xff] %vm734_vm0, %v733_v18 }
  0xf2   : > { %1127 = shalt.err (!%p1124_p5)
}
  0xf3   : > { %s1128_s8 = scalar_lea.hbm %s1722_s6, 11776  ;;  %s1132_s26 = scalar_lea.hbm %s1783_s3, 23552 }
  0xf4   : > { %p1129_p7 = scmp.ne.s32.totalorder %s1722_s6, %s1128_s8  ;;  %p1133_p9 = scmp.lt.s32.totalorder %s1722_s6, %s1783_s3 }
  0xf5   : > { %p1134_p11 = scmp.lt.s32.totalorder %s1132_s26, %s1128_s8 }
  0xf6   : > { %p1130_p4 = pnand %p1129_p7, %p1318_p13 }
  0xf7   : > { %p1135_p10 = por %p1134_p11, %p1133_p9 }
  0xf8   : > { %p1131_p6 = pneg %p1130_p4 }
  0xfa   : > { %p1136_p1 = pnand %p1135_p10, %p1131_p6 }
  0xfc   : > { %1139 = shalt.err (!%p1136_p1)
}
  0xfd   : > { %s1206_s27 = smov 128   ;;  %s1207_s29 = smov 8  }
  0xfe   : > { %986 = dma.vmem_to_hbm [thread:$0]  (%p1318_p13), %s1724_s5, 11776, %s1722_s6, %s828_s21, %s1206_s27, %s1206_s27, %s1207_s29  }
  0xff PF: > { %s858_s15 = sand.u32 1, %s1178_s12   ;;  %p1799_p8 = scmp.ne.s32.totalorder %s1790_s23, 0 }
 0x100   : > { %p1800_p12 = scmp.ge.s32.totalorder %s1198_s17, 2  ;;  %s859_s22 = scalar_lea.sflag [#allocation4], %s858_s15 }
 0x102   : > { %p997_p0 = pnand %p1800_p12, %p1799_p8 }
 0x104   : > { %p998_p2 = pneg %p997_p0 }
 0x106   : > { %1173 = dma.done.wait (%p998_p2), %s859_s22, 11776  }
 0x107   : > { %1175 = vsyncadd (%p998_p2), %s859_s22, 4294955520  ;;  %s20_s17 = sadd.s32 1, %s1198_s17   ;;  %s1801_s12 = smov %s1182_s13 }
 0x108   : > { %p17_p3 = scmp.ge.s32.totalorder %s20_s17, 4   ;;  %s1802_s13 = smov %s1186_s14 }
 0x109   : > { %s1803_s14 = smov %s1327_s19  ;;  %s1804_s15 = smov %s1194_s16 }
 0x10a   : > { %s1805_s16 = smov %s1807_s28  ;;  %19 = sbr.rel (!%p17_p3) target bundleno = 7 (0x7), region = 81 }
 0x10f   :  { %864 = vsyncpa [#allocation3], 1 }
 0x110   :  { %866 = vsyncpa [#allocation3 + $0x1], 1 }
 0x111   :  { %867 = vsyncpa [#allocation6], 1 }
 0x112   :  { %868 = vsyncpa [#allocation4], 1 }
 0x113   :  { %870 = vsyncpa [#allocation4 + $0x1], 1 }

</bundles_post_ra>
